<compile_context>
chip_gen: v6e
topology: v6e:2x2x1
jax: 0.10.0
libtpu: 0.0.40
codegen_flags: <defaults>
</compile_context>

<pallas_src>
import functools

import jax
import jax.numpy as jnp
from jax.experimental import pallas as pl
from jax.experimental.pallas import tpu as pltpu

_LANE = 128


def _round_up(x, m):
    return ((x + m - 1) // m) * m


def _focal_loss_kernel(x_ref, t_ref, loss_ref, *, alpha, gamma):
    # x_ref: (TN, C) logits (native dtype); t_ref: (TN, 1) int32 labels;
    # loss_ref: (TN, 1) f32 per-sample focal loss.  Rows past N (ragged last
    # tile) may compute garbage but are masked out of the HBM writeback.
    x = x_ref[...].astype(jnp.float32)                          # (TN, C)
    t = t_ref[...]                                              # (TN, 1) int32

    tn, c = x.shape
    col_ids = jax.lax.broadcasted_iota(jnp.int32, (tn, c), 1)

    # Target-class logit via a boolean mask (no float one-hot, no gather).
    x_tgt = jnp.sum(jnp.where(col_ids == t, x, 0.0), axis=1, keepdims=True)

    # Stable log-sum-exp: lse = max + log(sum(exp(x - max))).  exp/log go to
    # the EUP slot; the subtract/select are the only full-tile VPU passes.
    row_max = jnp.max(x, axis=1, keepdims=True)                 # (TN, 1)
    sum_exp = jnp.sum(jnp.exp(x - row_max), axis=1, keepdims=True)
    lse = row_max + jnp.log(sum_exp)                            # (TN, 1)

    ce = lse - x_tgt                                            # (TN, 1), >= 0
    p = jnp.exp(-ce)
    # Note: matches the PyTorch reference exactly; -expm1(-ce) would be more
    # accurate for well-classified samples but changes values vs. reference.
    one_minus_p = 1.0 - p
    if gamma == 2.0:
        focal_w = one_minus_p * one_minus_p
    elif gamma == 1.0:
        focal_w = one_minus_p
    elif gamma == 0.0:
        focal_w = jnp.ones_like(one_minus_p)
    else:
        focal_w = jnp.power(jnp.maximum(one_minus_p, 0.0), gamma)

    loss_ref[...] = (alpha * focal_w * ce).astype(loss_ref.dtype)


def _vmem_plan():
    """(residency_budget, vmem_limit, hard_cap) in bytes, per generation."""
    try:
        cap = pltpu.get_tpu_info().vmem_capacity_bytes
    except Exception:
        cap = 64 * 1024 * 1024  # assume the smallest (v7x-like) if query fails
    if cap >= 100 * 1024 * 1024:
        # v5e / v6e: 128 MiB physical -> big tiles amortize per-step overhead.
        return 48 * 1024 * 1024, 64 * 1024 * 1024, 112 * 1024 * 1024
    # v7x: 64 MiB physical -> keep total residency <= ~48 MiB.
    return 32 * 1024 * 1024, 48 * 1024 * 1024, 56 * 1024 * 1024


def focal_loss(inputs, targets, alpha=1.0, gamma=2.0, reduction="mean"):
    """inputs: (N, C) logits; targets: (N,) integer class labels."""
    n, c = inputs.shape
    targets2d = targets.reshape(n, 1).astype(jnp.int32)

    itemsize = jnp.dtype(inputs.dtype).itemsize
    sublane = max(8, 32 // itemsize)          # 8 for f32, 16 bf16, 32 int8/fp8
    c_pad = _round_up(c, _LANE)               # lane-padded class dim

    budget, vmem_limit, hard_cap = _vmem_plan()

    # Lane-padding-aware per-row VMEM residency:
    #   2 x logits block (double-buffered, native dtype, C padded to 128 lanes)
    # + 2 x (TN, 1) int32 targets block   -> 512 B/row each (lane padding)
    # + 2 x (TN, 1) f32  output block     -> 512 B/row each (lane padding)
    # + ~3 tiles worth of f32 in-kernel temporaries (upcast / exp / select).
    per_row = (2 * c_pad * itemsize
               + 2 * _LANE * 4
               + 2 * _LANE * 4
               + 3 * c_pad * 4)

    tn = (budget // per_row) // sublane * sublane
    tn = min(tn, _round_up(n, sublane))       # never bigger than the batch
    if tn < sublane:
        # TODO(synk): add a C-tiled two-pass log-sum-exp (inner "arbitrary"
        # grid axis with running max/sum scratch) for class counts so wide
        # that even a minimum-height tile misses the budget.
        tn = sublane
        vmem_limit = max(vmem_limit, min(2 * per_row * sublane, hard_cap))

    grid = (pl.cdiv(n, tn),)
    kernel = functools.partial(
        _focal_loss_kernel, alpha=float(alpha), gamma=float(gamma)
    )

    per_sample = pl.pallas_call(
        kernel,
        out_shape=jax.ShapeDtypeStruct((n, 1), jnp.float32),
        grid_spec=pltpu.PrefetchScalarGridSpec(
            num_scalar_prefetch=0,
            grid=grid,
            in_specs=[
                pl.BlockSpec((tn, c), lambda i: (i, 0)),
                pl.BlockSpec((tn, 1), lambda i: (i, 0)),
            ],
            out_specs=pl.BlockSpec((tn, 1), lambda i: (i, 0)),
        ),
        compiler_params=pltpu.CompilerParams(
            dimension_semantics=("parallel",),
            vmem_limit_bytes=vmem_limit,
        ),
        cost_estimate=pl.CostEstimate(
            flops=8 * n * c,
            transcendentals=n * (c + 3),
            bytes_accessed=n * c * itemsize + n * 4 + n * 4,
        ),
    )(inputs, targets2d)

    per_sample = per_sample[:, 0]
    if reduction == "mean":
        return jnp.mean(per_sample)
    return jnp.sum(per_sample)


def _reference_focal_loss(inputs, targets, alpha=1.0, gamma=2.0, reduction="mean"):
    # Pure-JAX reference mirroring the PyTorch FocalLoss module exactly.
    logp = jax.nn.log_softmax(inputs.astype(jnp.float32), axis=1)
    ce = -jnp.take_along_axis(logp, targets[:, None].astype(jnp.int32), axis=1)[:, 0]
    p = jnp.exp(-ce)
    loss = alpha * (1.0 - p) ** gamma * ce
    return jnp.mean(loss) if reduction == "mean" else jnp.sum(loss)


if __name__ == "__main__":
    key = jax.random.PRNGKey(0)
    k1, k2, k3, k4 = jax.random.split(key, 4)

    # Small shapes consistent with the forward: a batch of class logits.
    N, C = 8, 16
    inputs = jax.random.normal(k1, (N, C), dtype=jnp.float32)
    targets = jax.random.randint(k2, (N,), 0, C, dtype=jnp.int32)
    loss = jax.block_until_ready(focal_loss(inputs, targets, 1.0, 2.0, "mean"))
    ref = _reference_focal_loss(inputs, targets, 1.0, 2.0, "mean")
    assert jnp.allclose(loss, ref, atol=1e-5, rtol=1e-5), (loss, ref)

    # Ragged batch (N not a multiple of 8) exercises the un-padded boundary
    # tile path; 'sum' reduction exercises the other reduction branch.
    N2, C2 = 11, 16
    inputs2 = jax.random.normal(k3, (N2, C2), dtype=jnp.float32)
    targets2 = jax.random.randint(k4, (N2,), 0, C2, dtype=jnp.int32)
    loss2 = jax.block_until_ready(focal_loss(inputs2, targets2, 0.25, 2.0, "sum"))
    ref2 = _reference_focal_loss(inputs2, targets2, 0.25, 2.0, "sum")
    assert jnp.allclose(loss2, ref2, atol=1e-5, rtol=1e-5), (loss2, ref2)

    print("KERNEL_OK")
</pallas_src>

<mosaic_0001>
module attributes {stable_mosaic.version = 11 : i64} {
  func.func @_focal_loss_kernel(%arg0: i32, %arg1: memref<8x16xf32, #tpu.memory_space<vmem>>, %arg2: memref<8x1xi32, #tpu.memory_space<vmem>>, %arg3: memref<8x1xf32, #tpu.memory_space<vmem>>) attributes {dimension_semantics = [#tpu.dimension_semantics<parallel>], iteration_bounds = array<i64: 1>, scalar_prefetch = 0 : i64, scratch_operands = 0 : i64, tpu.core_type = #tpu.core_type<tc>, window_params = [{transform_indices = @transform_0, window_bounds = array<i64: 8, 16>}, {transform_indices = @transform_1, window_bounds = array<i64: 8, 1>}, {transform_indices = @transform_2, window_bounds = array<i64: 8, 1>}]} {
    %c0 = arith.constant 0 : index
    %c0_0 = arith.constant 0 : index
    %0 = vector.load %arg1[%c0, %c0_0] : memref<8x16xf32, #tpu.memory_space<vmem>>, vector<8x16xf32>
    %c0_1 = arith.constant 0 : index
    %c0_2 = arith.constant 0 : index
    %1 = vector.load %arg2[%c0_1, %c0_2] : memref<8x1xi32, #tpu.memory_space<vmem>>, vector<8x1xi32>
    %2 = tpu.iota {dimensions = array<i32: 1>} : vector<8x16xi32>
    %3 = vector.broadcast %1 : vector<8x1xi32> to vector<8x16xi32>
    %4 = arith.cmpi eq, %2, %3 : vector<8x16xi32>
    %cst = arith.constant 0.000000e+00 : f32
    %5 = vector.broadcast %cst : f32 to vector<8x16xf32>
    %6 = arith.select %4, %0, %5 : vector<8x16xi1>, vector<8x16xf32>
    %cst_3 = arith.constant dense<0.000000e+00> : vector<8xf32>
    %7 = vector.multi_reduction <add>, %6, %cst_3 [1] : vector<8x16xf32> to vector<8xf32>
    %8 = vector.shape_cast %7 : vector<8xf32> to vector<8x1xf32>
    %cst_4 = arith.constant dense<0xFF800000> : vector<8xf32>
    %9 = vector.multi_reduction <maximumf>, %0, %cst_4 [1] : vector<8x16xf32> to vector<8xf32>
    %10 = vector.shape_cast %9 : vector<8xf32> to vector<8x1xf32>
    %11 = vector.broadcast %10 : vector<8x1xf32> to vector<8x16xf32>
    %12 = arith.subf %0, %11 : vector<8x16xf32>
    %13 = math.exp %12 : vector<8x16xf32>
    %cst_5 = arith.constant dense<0.000000e+00> : vector<8xf32>
    %14 = vector.multi_reduction <add>, %13, %cst_5 [1] : vector<8x16xf32> to vector<8xf32>
    %15 = vector.shape_cast %14 : vector<8xf32> to vector<8x1xf32>
    %16 = math.log %15 : vector<8x1xf32>
    %17 = arith.addf %10, %16 : vector<8x1xf32>
    %18 = arith.subf %17, %8 : vector<8x1xf32>
    %cst_6 = arith.constant 0.000000e+00 : f32
    %19 = vector.broadcast %cst_6 : f32 to vector<8x1xf32>
    %20 = arith.subf %19, %18 : vector<8x1xf32>
    %21 = math.exp %20 : vector<8x1xf32>
    %cst_7 = arith.constant 1.000000e+00 : f32
    %22 = vector.broadcast %cst_7 : f32 to vector<8x1xf32>
    %23 = arith.subf %22, %21 : vector<8x1xf32>
    %24 = arith.mulf %23, %23 : vector<8x1xf32>
    %cst_8 = arith.constant 1.000000e+00 : f32
    %25 = vector.broadcast %cst_8 : f32 to vector<8x1xf32>
    %26 = arith.mulf %25, %24 : vector<8x1xf32>
    %27 = arith.mulf %26, %18 : vector<8x1xf32>
    %c0_9 = arith.constant 0 : index
    %c0_10 = arith.constant 0 : index
    %28 = vector.load %arg3[%c0_9, %c0_10] : memref<8x1xf32, #tpu.memory_space<vmem>>, vector<8x1xf32>
    tpu.vector_store %arg3[%c0_9, %c0_10], %27 {strides = array<i32>} : memref<8x1xf32, #tpu.memory_space<vmem>>, vector<8x1xf32>,
    return
  }
  func.func @transform_0(%arg0: i32) -> (i32, i32) {
    %c0_i32 = arith.constant 0 : i32
    %c0_i32_0 = arith.constant 0 : i32
    return %arg0, %c0_i32 : i32, i32
  }
  func.func @transform_1(%arg0: i32) -> (i32, i32) {
    %c0_i32 = arith.constant 0 : i32
    %c0_i32_0 = arith.constant 0 : i32
    return %arg0, %c0_i32 : i32, i32
  }
  func.func @transform_2(%arg0: i32) -> (i32, i32) {
    %c0_i32 = arith.constant 0 : i32
    %c0_i32_0 = arith.constant 0 : i32
    return %arg0, %c0_i32 : i32, i32
  }
}

</mosaic_0001>

<bundles_post_ra>
// kernel: tpu_custom_call.1
= control target key start
LH: loop header
LB: loop body
LE: loop exit
PB: predicated region body
PF: predicated region fallthrough
CT: control target
= control target key end

     0   :  { %vm20_vm0 = vcmask 130048   ;;  %v57_v1 = vmov 0   ;;  %v13_v7 = vlaneseq  ;;  %vm43_vm2 = vcmask 7168   ;;  %s85_s0 = inlined_call_operand.vmem [shape: f32[8,16], index: 0, kind: input, shape index: {}]   ;;  %s86_s1 = inlined_call_operand.vmem [shape: s32[8,1], index: 1, kind: input, shape index: {}]   ;;  %s87_s2 = inlined_call_operand.vmem [shape: f32[8,1], index: 2, kind: output, shape index: {}]  }
   0x1   :  { %v11_v0 = vld [vmem:[%s85_s0] sm:$0xff]  ;;  %50 = vset.pattern.permute.xlu0 %v57_v1 }
   0x2   :  { %v24_v2 = vsel %vm20_vm0, %v11_v0, -inf  ;;  %v12_v3 = vld [vmem:[%s86_s1] sm:$0xff]  ;;  %v14_v8 = vand.u32 127, %v13_v7 }
   0x3   :  { %25 = vmax.xlane.f32.xlu0 %v24_v2 }
  0x19   :  { %16 = vperm.xlu0 %50, %v12_v3  }
  0x8c   :  { %v26_v4 = vpop.xlane.xlu0 %25 }
  0x8d   :  { %v27_v5 = vsub.f32 %v11_v0, %v26_v4 }
  0x8f   :  { %v28_v6 = vmul.f32 1.442695, %v27_v5 }
  0x91   :  { %51 = vpow2.f32 %v28_v6 }
  0x94   :  { %v17_v9 = vpop.permute.xlu0 %16 }
  0x95   :  { %vm18_vm1 = vcmp.eq.s32.totalorder %v14_v8, %v17_v9 }
  0x96   :  { %v19_v11 = vsel %vm18_vm1, %v11_v0, 0.0 }
  0x97   :  { %v21_v13 = vsel %vm20_vm0, %v19_v11, 0.0 }
  0x9e   :  { %v52_v10 = vpop.eup %51 }
  0x9f   :  { %v30_v12 = vsel %vm20_vm0, %v52_v10, 0.0 }
  0xa0   :  { %31 = vadd.xlane.f32.xlu1 %v30_v12 }
  0xa4   :  { %22 = vadd.xlane.f32.xlu1 %v21_v13 }
 0x129   :  { %v32_v14 = vpop.xlane.xlu1 %31 }
 0x12a   :  { %53 = vlog2.f32 %v32_v14 }
 0x12d   :  { %v23_v17 = vpop.xlane.xlu1 %22 }
 0x137   :  { %v54_v15 = vpop.eup %53 }
 0x138   :  { %v34_v16 = vmul.f32 0.6931472, %v54_v15 }
 0x13a   :  { %v35_v18 = vadd.f32 %v34_v16, %v26_v4 }
 0x13c   :  { %v36_v19 = vsub.f32 %v35_v18, %v23_v17 }
 0x13e   :  { %v37_v20 = vsub.f32 0.0, %v36_v19 }
 0x140   :  { %v38_v21 = vmul.f32 1.442695, %v37_v20 }
 0x142   :  { %55 = vpow2.f32 %v38_v21 }
 0x14f   :  { %v56_v22 = vpop.eup %55 }
 0x150   :  { %v40_v23 = vsub.f32 1.0, %v56_v22 }
 0x152   :  { %v41_v24 = vmul.f32 %v40_v23, %v40_v23 }
 0x154   :  { %v42_v25 = vmul.f32 %v41_v24, %v36_v19 }
 0x156   :  { %44 = vst.msk [vmem:[%s87_s2] sm:$0xff] %vm43_vm2, %v42_v25 }

</bundles_post_ra>
